<compile_context>
chip_gen: v6e
topology: v6e:2x2x1
jax: 0.10.0
libtpu: 0.0.40
codegen_flags: <defaults>
</compile_context>

<pallas_src>
import numpy as np
import jax
import jax.numpy as jnp
from jax.experimental import pallas as pl
from jax.experimental.pallas import tpu as pltpu

GUIDANCE_SCALE = 7.5


def _sdxl_scheduler_kernel(
    scale_w_ref,      # SMEM (n,)  : dsigma_i / sqrt(sigma_i^2 + 1)
    dsigma_ref,       # SMEM (n,)  : sigma_{i+1} - sigma_i
    t_ref,            # SMEM (n,)  : timesteps
    init_ns_ref,      # SMEM (1,)  : init_noise_sigma = sqrt(sigma_0^2 + 1)
    w_chan_ref,       # SMEM (C,C) : 1x1 channel-mix weights (scalar reads)
    sample_ref,       # VMEM (C, S_chunk, 128)
    cond_base_ref,    # VMEM (C, 2): loop-invariant conditioning (uncond/text)
    w_time_ref,       # VMEM (C, 1)
    out_ref,          # VMEM (C, S_chunk, 128)
):
    C, _, L = out_ref.shape
    n_steps = t_ref.shape[0]

    # Loop-invariant small tensors: load once.
    cond_base = cond_base_ref[...]          # [C, 2]
    w_time = w_time_ref[...]                # [C, 1]

    # sample = sample * scheduler.init_noise_sigma   (once, before the loop)
    x0 = sample_ref[...] * init_ns_ref[0]   # [C, S, L]
    init = tuple(x0[c] for c in range(C))   # carry channels separately

    def step(i, xs):
        t = t_ref[i]
        sw = scale_w_ref[i]                 # dsigma * scale_model_input factor
        ds = dsigma_ref[i]

        # --- per-step conditioning (tiny [C,2] vector work, EUP tanh) ---
        emb = jnp.tanh(cond_base + t * w_time)                          # [C, 2]
        # CFG folded onto the embedding: the channel-mix term is shared by
        # both branches, so uncond + g*(text - uncond) only touches emb.
        cfg = (1.0 - GUIDANCE_SCALE) * emb[:, 0:1] \
            + GUIDANCE_SCALE * emb[:, 1:2]                              # [C, 1]
        # Euler dsigma folded into the bias; lane-broadcast once, then each
        # channel row is sublane-broadcast into its tile below.
        bias_l = jnp.broadcast_to(ds * cfg, (C, L))                     # [C, 128]

        # --- Euler step with the channel mix unrolled on the VPU ---
        # new[c] = cur[c] + ds*cfg[c] + sum_cp (ds/sqrt(s^2+1))*W[c,cp]*cur[cp]
        new = []
        for c in range(C):
            acc = xs[c] + bias_l[c:c + 1, :]          # [S,128] + [1,128]
            for cp in range(C):
                a = sw * w_chan_ref[c, cp]            # scalar-unit math (SMEM)
                acc = acc + a * xs[cp]
            new.append(acc)
        return tuple(new)

    xs = jax.lax.fori_loop(0, n_steps, step, init)

    for c in range(C):
        out_ref[c] = xs[c]


def make_euler_schedule(num_inference_steps, num_train_timesteps=1000,
                        beta_start=0.00085, beta_end=0.012):
    """Euler-discrete sigmas / timesteps (scaled_linear betas, like SDXL)."""
    betas = np.linspace(beta_start ** 0.5, beta_end ** 0.5,
                        num_train_timesteps, dtype=np.float64) ** 2
    alphas_cumprod = np.cumprod(1.0 - betas)
    sigmas_all = np.sqrt((1.0 - alphas_cumprod) / alphas_cumprod)
    timesteps = np.linspace(0, num_train_timesteps - 1,
                            num_inference_steps, dtype=np.float64)[::-1].copy()
    sigmas = np.interp(timesteps, np.arange(num_train_timesteps), sigmas_all)
    sigmas = np.concatenate([sigmas, [0.0]]).astype(np.float32)
    return jnp.asarray(sigmas), jnp.asarray(timesteps.astype(np.float32))


def sdxl_scheduler_forward(sample, prompt_embeds, text_embeds, time_ids,
                           params, sigmas, timesteps):
    B, C, H, W = sample.shape
    assert B == 1, "kernel layout assumes latent batch of 1 (CFG batch is 2)"
    HW = H * W
    assert HW % 128 == 0, "spatial size must be a multiple of 128 lanes"
    S = HW // 128

    w_chan, w_prompt, w_text, w_tids, w_time, b = params

    n_steps = timesteps.shape[0]
    assert sigmas.shape[0] == n_steps + 1, "need num_steps+1 sigmas (last = 0)"

    # ----- per-step scalars, precomputed outside the kernel (SMEM inputs) ---
    sigmas = sigmas.astype(jnp.float32)
    t32 = timesteps.astype(jnp.float32)
    sig = sigmas[:-1]
    dsigma = sigmas[1:] - sig                         # Euler step size
    inv_scale = jax.lax.rsqrt(sig * sig + 1.0)        # scale_model_input factor
    scale_w = dsigma * inv_scale
    init_ns = jnp.sqrt(sigmas[0] * sigmas[0] + 1.0).reshape(1)

    # ----- loop-invariant conditioning, hoisted out of the denoising loop ---
    pooled = jnp.mean(prompt_embeds.astype(jnp.float32), axis=1)       # [2, HID]
    cond_base = (w_prompt @ pooled.T
                 + w_text @ text_embeds.astype(jnp.float32).T
                 + w_tids @ time_ids.astype(jnp.float32).T
                 + b).astype(jnp.float32)                              # [C, 2]

    # ----- lane-dense latent layout: [C, HW//128, 128] ----------------------
    x = sample.reshape(C, S, 128).astype(jnp.float32)

    # Optional spatial split so v7x can shard across its two TensorCores
    # (only when each chunk stays sublane-dense, i.e. S_chunk % 8 == 0).
    n_chunks = 2 if S % 16 == 0 else 1
    S_chunk = S // n_chunks

    smem = pl.BlockSpec(memory_space=pltpu.MemorySpace.SMEM)

    out = pl.pallas_call(
        _sdxl_scheduler_kernel,
        out_shape=jax.ShapeDtypeStruct((C, S, 128), jnp.float32),
        grid_spec=pltpu.PrefetchScalarGridSpec(
            num_scalar_prefetch=0,
            grid=(n_chunks,),
            in_specs=[
                smem,                                               # scale_w
                smem,                                               # dsigma
                smem,                                               # timesteps
                smem,                                               # init_noise_sigma
                smem,                                               # w_chan
                pl.BlockSpec((C, S_chunk, 128), lambda j: (0, j, 0)),  # sample
                pl.BlockSpec((C, 2), lambda j: (0, 0)),             # cond_base
                pl.BlockSpec((C, 1), lambda j: (0, 0)),             # w_time
            ],
            out_specs=pl.BlockSpec((C, S_chunk, 128), lambda j: (0, j, 0)),
        ),
        compiler_params=pltpu.CompilerParams(
            dimension_semantics=("parallel",)),
    )(scale_w, dsigma, t32, init_ns, w_chan.astype(jnp.float32),
      x, cond_base, w_time.astype(jnp.float32))

    return out.reshape(B, C, H, W)


def _reference_forward(sample, prompt_embeds, text_embeds, time_ids,
                       params, sigmas, timesteps):
    """Plain-JAX reference using the original (unfolded) scheduler math."""
    w_chan, w_prompt, w_text, w_tids, w_time, b = params
    B, C, H, W = sample.shape
    x = sample.reshape(C, H * W).astype(jnp.float32)
    pooled = jnp.mean(prompt_embeds.astype(jnp.float32), axis=1)
    cond = (w_prompt @ pooled.T + w_text @ text_embeds.astype(jnp.float32).T
            + w_tids @ time_ids.astype(jnp.float32).T + b)
    cur = x * jnp.sqrt(sigmas[0] ** 2 + 1.0)
    for i in range(timesteps.shape[0]):
        sigma, sigma_next, t = sigmas[i], sigmas[i + 1], timesteps[i]
        x_in = cur / jnp.sqrt(sigma ** 2 + 1.0)
        emb = jnp.tanh(cond + t * w_time)
        mixed = w_chan @ x_in
        noise_u = mixed + emb[:, 0:1]
        noise_t = mixed + emb[:, 1:2]
        noise = noise_u + GUIDANCE_SCALE * (noise_t - noise_u)
        cur = cur + noise * (sigma_next - sigma)
    return cur.reshape(B, C, H, W)


if __name__ == "__main__":
    key = jax.random.PRNGKey(0)
    ks = jax.random.split(key, 10)

    # Small SDXL-like shapes: latent [1,4,16,16], CFG batch 2, seq 8, hidden 32.
    B, C, H, W = 1, 4, 16, 16
    SEQ, HID, PD, TD = 8, 32, 32, 6
    NUM_STEPS = 4

    sample = jax.random.normal(ks[0], (B, C, H, W), jnp.float32)
    prompt_embeds = jax.random.normal(ks[1], (2 * B, SEQ, HID), jnp.float32)
    text_embeds = jax.random.normal(ks[2], (2 * B, PD), jnp.float32)
    time_ids = jnp.tile(
        jnp.array([[H * 8.0, W * 8.0, 0.0, 0.0, H * 8.0, W * 8.0]],
                  jnp.float32), (2 * B, 1))

    # Deterministic surrogate-UNet parameters.
    w_chan = jnp.eye(C, dtype=jnp.float32) + 0.05 * jax.random.normal(ks[3], (C, C), jnp.float32)
    w_prompt = 0.02 * jax.random.normal(ks[4], (C, HID), jnp.float32)
    w_text = 0.02 * jax.random.normal(ks[5], (C, PD), jnp.float32)
    w_tids = 0.01 * jax.random.normal(ks[6], (C, TD), jnp.float32)
    w_time = 0.001 * jax.random.normal(ks[7], (C, 1), jnp.float32)
    bias = 0.02 * jax.random.normal(ks[8], (C, 1), jnp.float32)
    params = (w_chan, w_prompt, w_text, w_tids, w_time, bias)

    sigmas, timesteps = make_euler_schedule(NUM_STEPS)

    result = sdxl_scheduler_forward(sample, prompt_embeds, text_embeds,
                                    time_ids, params, sigmas, timesteps)
    jax.block_until_ready(result)
    assert result.shape == (B, C, H, W)
    assert bool(jnp.all(jnp.isfinite(result)))

    ref = _reference_forward(sample, prompt_embeds, text_embeds, time_ids,
                             params, sigmas, timesteps)
    assert bool(jnp.allclose(result, ref, rtol=1e-3, atol=1e-2))

    print("KERNEL_OK")
</pallas_src>

<mosaic_0001>
module attributes {stable_mosaic.version = 11 : i64} {
  func.func @_sdxl_scheduler_kernel(%arg0: i32, %arg1: memref<4xf32, #tpu.memory_space<smem>>, %arg2: memref<4xf32, #tpu.memory_space<smem>>, %arg3: memref<4xf32, #tpu.memory_space<smem>>, %arg4: memref<1xf32, #tpu.memory_space<smem>>, %arg5: memref<4x4xf32, #tpu.memory_space<smem>>, %arg6: memref<4x2x128xf32, #tpu.memory_space<vmem>>, %arg7: memref<4x2xf32, #tpu.memory_space<vmem>>, %arg8: memref<4x1xf32, #tpu.memory_space<vmem>>, %arg9: memref<4x2x128xf32, #tpu.memory_space<vmem>>) attributes {dimension_semantics = [#tpu.dimension_semantics<parallel>], iteration_bounds = array<i64: 1>, scalar_prefetch = 0 : i64, scratch_operands = 0 : i64, tpu.core_type = #tpu.core_type<tc>, window_params = [{transform_indices = @transform_0, window_bounds = array<i64: 4>}, {transform_indices = @transform_1, window_bounds = array<i64: 4>}, {transform_indices = @transform_2, window_bounds = array<i64: 4>}, {transform_indices = @transform_3, window_bounds = array<i64: 1>}, {transform_indices = @transform_4, window_bounds = array<i64: 4, 4>}, {transform_indices = @transform_5, window_bounds = array<i64: 4, 2, 128>}, {pipeline_mode = #tpu.pipeline_mode<synchronous>, transform_indices = @transform_6, window_bounds = array<i64: 4, 2>}, {pipeline_mode = #tpu.pipeline_mode<synchronous>, transform_indices = @transform_7, window_bounds = array<i64: 4, 1>}, {transform_indices = @transform_8, window_bounds = array<i64: 4, 2, 128>}]} {
    %c0 = arith.constant 0 : index
    %c0_0 = arith.constant 0 : index
    %0 = vector.load %arg7[%c0, %c0_0] : memref<4x2xf32, #tpu.memory_space<vmem>>, vector<4x2xf32>
    %c0_1 = arith.constant 0 : index
    %c0_2 = arith.constant 0 : index
    %1 = vector.load %arg8[%c0_1, %c0_2] : memref<4x1xf32, #tpu.memory_space<vmem>>, vector<4x1xf32>
    %c0_3 = arith.constant 0 : index
    %c0_4 = arith.constant 0 : index
    %c0_5 = arith.constant 0 : index
    %2 = vector.load %arg6[%c0_3, %c0_4, %c0_5] : memref<4x2x128xf32, #tpu.memory_space<vmem>>, vector<4x2x128xf32>
    %c0_6 = arith.constant 0 : index
    %3 = memref.load %arg4[%c0_6] : memref<1xf32, #tpu.memory_space<smem>>
    %4 = vector.broadcast %3 : f32 to vector<4x2x128xf32>
    %5 = arith.mulf %2, %4 : vector<4x2x128xf32>
    %6 = vector.extract_strided_slice %5 {offsets = [0, 0, 0], sizes = [1, 2, 128], strides = [1, 1, 1]} : vector<4x2x128xf32> to vector<1x2x128xf32>
    %7 = vector.shape_cast %6 : vector<1x2x128xf32> to vector<2x128xf32>
    %8 = vector.extract_strided_slice %5 {offsets = [1, 0, 0], sizes = [1, 2, 128], strides = [1, 1, 1]} : vector<4x2x128xf32> to vector<1x2x128xf32>
    %9 = vector.shape_cast %8 : vector<1x2x128xf32> to vector<2x128xf32>
    %10 = vector.extract_strided_slice %5 {offsets = [2, 0, 0], sizes = [1, 2, 128], strides = [1, 1, 1]} : vector<4x2x128xf32> to vector<1x2x128xf32>
    %11 = vector.shape_cast %10 : vector<1x2x128xf32> to vector<2x128xf32>
    %12 = vector.extract_strided_slice %5 {offsets = [3, 0, 0], sizes = [1, 2, 128], strides = [1, 1, 1]} : vector<4x2x128xf32> to vector<1x2x128xf32>
    %13 = vector.shape_cast %12 : vector<1x2x128xf32> to vector<2x128xf32>
    %c0_i32 = arith.constant 0 : i32
    %c4_i32 = arith.constant 4 : i32
    %14 = arith.addi %c0_i32, %c4_i32 : i32
    %c1_i32 = arith.constant 1 : i32
    %15:4 = scf.for %arg10 = %c0_i32 to %14 step %c1_i32 iter_args(%arg11 = %7, %arg12 = %9, %arg13 = %11, %arg14 = %13) -> (vector<2x128xf32>, vector<2x128xf32>, vector<2x128xf32>, vector<2x128xf32>)  : i32 {
      %28 = arith.index_cast %arg10 : i32 to index
      %29 = memref.load %arg3[%28] : memref<4xf32, #tpu.memory_space<smem>>
      %30 = arith.index_cast %arg10 : i32 to index
      %31 = memref.load %arg1[%30] : memref<4xf32, #tpu.memory_space<smem>>
      %32 = arith.index_cast %arg10 : i32 to index
      %33 = memref.load %arg2[%32] : memref<4xf32, #tpu.memory_space<smem>>
      %34 = vector.broadcast %29 : f32 to vector<4x1xf32>
      %35 = arith.mulf %34, %1 : vector<4x1xf32>
      %36 = vector.broadcast %35 : vector<4x1xf32> to vector<4x2xf32>
      %37 = arith.addf %0, %36 : vector<4x2xf32>
      %38 = math.tanh %37 : vector<4x2xf32>
      %39 = vector.extract_strided_slice %38 {offsets = [0, 0], sizes = [4, 1], strides = [1, 1]} : vector<4x2xf32> to vector<4x1xf32>
      %cst = arith.constant -6.500000e+00 : f32
      %40 = vector.broadcast %cst : f32 to vector<4x1xf32>
      %41 = arith.mulf %40, %39 : vector<4x1xf32>
      %42 = vector.extract_strided_slice %38 {offsets = [0, 1], sizes = [4, 1], strides = [1, 1]} : vector<4x2xf32> to vector<4x1xf32>
      %cst_17 = arith.constant 7.500000e+00 : f32
      %43 = vector.broadcast %cst_17 : f32 to vector<4x1xf32>
      %44 = arith.mulf %43, %42 : vector<4x1xf32>
      %45 = arith.addf %41, %44 : vector<4x1xf32>
      %46 = vector.broadcast %33 : f32 to vector<4x1xf32>
      %47 = arith.mulf %46, %45 : vector<4x1xf32>
      %48 = vector.shape_cast %47 : vector<4x1xf32> to vector<4x1xf32>
      %49 = vector.broadcast %48 : vector<4x1xf32> to vector<4x128xf32>
      %50 = vector.extract_strided_slice %49 {offsets = [0, 0], sizes = [1, 128], strides = [1, 1]} : vector<4x128xf32> to vector<1x128xf32>
      %51 = vector.broadcast %50 : vector<1x128xf32> to vector<2x128xf32>
      %52 = arith.addf %arg11, %51 : vector<2x128xf32>
      %c0_18 = arith.constant 0 : index
      %c0_19 = arith.constant 0 : index
      %53 = memref.load %arg5[%c0_18, %c0_19] : memref<4x4xf32, #tpu.memory_space<smem>>
      %54 = arith.mulf %31, %53 : f32
      %55 = vector.broadcast %54 : f32 to vector<2x128xf32>
      %56 = arith.mulf %55, %arg11 : vector<2x128xf32>
      %57 = arith.addf %52, %56 : vector<2x128xf32>
      %c0_20 = arith.constant 0 : index
      %c1_21 = arith.constant 1 : index
      %58 = memref.load %arg5[%c0_20, %c1_21] : memref<4x4xf32, #tpu.memory_space<smem>>
      %59 = arith.mulf %31, %58 : f32
      %60 = vector.broadcast %59 : f32 to vector<2x128xf32>
      %61 = arith.mulf %60, %arg12 : vector<2x128xf32>
      %62 = arith.addf %57, %61 : vector<2x128xf32>
      %c0_22 = arith.constant 0 : index
      %c2_23 = arith.constant 2 : index
      %63 = memref.load %arg5[%c0_22, %c2_23] : memref<4x4xf32, #tpu.memory_space<smem>>
      %64 = arith.mulf %31, %63 : f32
      %65 = vector.broadcast %64 : f32 to vector<2x128xf32>
      %66 = arith.mulf %65, %arg13 : vector<2x128xf32>
      %67 = arith.addf %62, %66 : vector<2x128xf32>
      %c0_24 = arith.constant 0 : index
      %c3_25 = arith.constant 3 : index
      %68 = memref.load %arg5[%c0_24, %c3_25] : memref<4x4xf32, #tpu.memory_space<smem>>
      %69 = arith.mulf %31, %68 : f32
      %70 = vector.broadcast %69 : f32 to vector<2x128xf32>
      %71 = arith.mulf %70, %arg14 : vector<2x128xf32>
      %72 = arith.addf %67, %71 : vector<2x128xf32>
      %73 = vector.extract_strided_slice %49 {offsets = [1, 0], sizes = [1, 128], strides = [1, 1]} : vector<4x128xf32> to vector<1x128xf32>
      %74 = vector.broadcast %73 : vector<1x128xf32> to vector<2x128xf32>
      %75 = arith.addf %arg12, %74 : vector<2x128xf32>
      %c1_26 = arith.constant 1 : index
      %c0_27 = arith.constant 0 : index
      %76 = memref.load %arg5[%c1_26, %c0_27] : memref<4x4xf32, #tpu.memory_space<smem>>
      %77 = arith.mulf %31, %76 : f32
      %78 = vector.broadcast %77 : f32 to vector<2x128xf32>
      %79 = arith.mulf %78, %arg11 : vector<2x128xf32>
      %80 = arith.addf %75, %79 : vector<2x128xf32>
      %c1_28 = arith.constant 1 : index
      %c1_29 = arith.constant 1 : index
      %81 = memref.load %arg5[%c1_28, %c1_29] : memref<4x4xf32, #tpu.memory_space<smem>>
      %82 = arith.mulf %31, %81 : f32
      %83 = vector.broadcast %82 : f32 to vector<2x128xf32>
      %84 = arith.mulf %83, %arg12 : vector<2x128xf32>
      %85 = arith.addf %80, %84 : vector<2x128xf32>
      %c1_30 = arith.constant 1 : index
      %c2_31 = arith.constant 2 : index
      %86 = memref.load %arg5[%c1_30, %c2_31] : memref<4x4xf32, #tpu.memory_space<smem>>
      %87 = arith.mulf %31, %86 : f32
      %88 = vector.broadcast %87 : f32 to vector<2x128xf32>
      %89 = arith.mulf %88, %arg13 : vector<2x128xf32>
      %90 = arith.addf %85, %89 : vector<2x128xf32>
      %c1_32 = arith.constant 1 : index
      %c3_33 = arith.constant 3 : index
      %91 = memref.load %arg5[%c1_32, %c3_33] : memref<4x4xf32, #tpu.memory_space<smem>>
      %92 = arith.mulf %31, %91 : f32
      %93 = vector.broadcast %92 : f32 to vector<2x128xf32>
      %94 = arith.mulf %93, %arg14 : vector<2x128xf32>
      %95 = arith.addf %90, %94 : vector<2x128xf32>
      %96 = vector.extract_strided_slice %49 {offsets = [2, 0], sizes = [1, 128], strides = [1, 1]} : vector<4x128xf32> to vector<1x128xf32>
      %97 = vector.broadcast %96 : vector<1x128xf32> to vector<2x128xf32>
      %98 = arith.addf %arg13, %97 : vector<2x128xf32>
      %c2_34 = arith.constant 2 : index
      %c0_35 = arith.constant 0 : index
      %99 = memref.load %arg5[%c2_34, %c0_35] : memref<4x4xf32, #tpu.memory_space<smem>>
      %100 = arith.mulf %31, %99 : f32
      %101 = vector.broadcast %100 : f32 to vector<2x128xf32>
      %102 = arith.mulf %101, %arg11 : vector<2x128xf32>
      %103 = arith.addf %98, %102 : vector<2x128xf32>
      %c2_36 = arith.constant 2 : index
      %c1_37 = arith.constant 1 : index
      %104 = memref.load %arg5[%c2_36, %c1_37] : memref<4x4xf32, #tpu.memory_space<smem>>
      %105 = arith.mulf %31, %104 : f32
      %106 = vector.broadcast %105 : f32 to vector<2x128xf32>
      %107 = arith.mulf %106, %arg12 : vector<2x128xf32>
      %108 = arith.addf %103, %107 : vector<2x128xf32>
      %c2_38 = arith.constant 2 : index
      %c2_39 = arith.constant 2 : index
      %109 = memref.load %arg5[%c2_38, %c2_39] : memref<4x4xf32, #tpu.memory_space<smem>>
      %110 = arith.mulf %31, %109 : f32
      %111 = vector.broadcast %110 : f32 to vector<2x128xf32>
      %112 = arith.mulf %111, %arg13 : vector<2x128xf32>
      %113 = arith.addf %108, %112 : vector<2x128xf32>
      %c2_40 = arith.constant 2 : index
      %c3_41 = arith.constant 3 : index
      %114 = memref.load %arg5[%c2_40, %c3_41] : memref<4x4xf32, #tpu.memory_space<smem>>
      %115 = arith.mulf %31, %114 : f32
      %116 = vector.broadcast %115 : f32 to vector<2x128xf32>
      %117 = arith.mulf %116, %arg14 : vector<2x128xf32>
      %118 = arith.addf %113, %117 : vector<2x128xf32>
      %119 = vector.extract_strided_slice %49 {offsets = [3, 0], sizes = [1, 128], strides = [1, 1]} : vector<4x128xf32> to vector<1x128xf32>
      %120 = vector.broadcast %119 : vector<1x128xf32> to vector<2x128xf32>
      %121 = arith.addf %arg14, %120 : vector<2x128xf32>
      %c3_42 = arith.constant 3 : index
      %c0_43 = arith.constant 0 : index
      %122 = memref.load %arg5[%c3_42, %c0_43] : memref<4x4xf32, #tpu.memory_space<smem>>
      %123 = arith.mulf %31, %122 : f32
      %124 = vector.broadcast %123 : f32 to vector<2x128xf32>
      %125 = arith.mulf %124, %arg11 : vector<2x128xf32>
      %126 = arith.addf %121, %125 : vector<2x128xf32>
      %c3_44 = arith.constant 3 : index
      %c1_45 = arith.constant 1 : index
      %127 = memref.load %arg5[%c3_44, %c1_45] : memref<4x4xf32, #tpu.memory_space<smem>>
      %128 = arith.mulf %31, %127 : f32
      %129 = vector.broadcast %128 : f32 to vector<2x128xf32>
      %130 = arith.mulf %129, %arg12 : vector<2x128xf32>
      %131 = arith.addf %126, %130 : vector<2x128xf32>
      %c3_46 = arith.constant 3 : index
      %c2_47 = arith.constant 2 : index
      %132 = memref.load %arg5[%c3_46, %c2_47] : memref<4x4xf32, #tpu.memory_space<smem>>
      %133 = arith.mulf %31, %132 : f32
      %134 = vector.broadcast %133 : f32 to vector<2x128xf32>
      %135 = arith.mulf %134, %arg13 : vector<2x128xf32>
      %136 = arith.addf %131, %135 : vector<2x128xf32>
      %c3_48 = arith.constant 3 : index
      %c3_49 = arith.constant 3 : index
      %137 = memref.load %arg5[%c3_48, %c3_49] : memref<4x4xf32, #tpu.memory_space<smem>>
      %138 = arith.mulf %31, %137 : f32
      %139 = vector.broadcast %138 : f32 to vector<2x128xf32>
      %140 = arith.mulf %139, %arg14 : vector<2x128xf32>
      %141 = arith.addf %136, %140 : vector<2x128xf32>
      scf.yield %72, %95, %118, %141 : vector<2x128xf32>, vector<2x128xf32>, vector<2x128xf32>, vector<2x128xf32>
    }
    %c4_i32_7 = arith.constant 4 : i32
    %c0_8 = arith.constant 0 : index
    %c0_9 = arith.constant 0 : index
    %c0_10 = arith.constant 0 : index
    %16 = vector.load %arg9[%c0_8, %c0_9, %c0_10] : memref<4x2x128xf32, #tpu.memory_space<vmem>>, vector<1x2x128xf32>
    %17 = vector.shape_cast %16 : vector<1x2x128xf32> to vector<2x128xf32>
    %18 = vector.shape_cast %15#0 : vector<2x128xf32> to vector<1x2x128xf32>
    tpu.vector_store %arg9[%c0_8, %c0_9, %c0_10], %18 {strides = array<i32>} : memref<4x2x128xf32, #tpu.memory_space<vmem>>, vector<1x2x128xf32>,
    %c1 = arith.constant 1 : index
    %c0_11 = arith.constant 0 : index
    %c0_12 = arith.constant 0 : index
    %19 = vector.load %arg9[%c1, %c0_11, %c0_12] : memref<4x2x128xf32, #tpu.memory_space<vmem>>, vector<1x2x128xf32>
    %20 = vector.shape_cast %19 : vector<1x2x128xf32> to vector<2x128xf32>
    %21 = vector.shape_cast %15#1 : vector<2x128xf32> to vector<1x2x128xf32>
    tpu.vector_store %arg9[%c1, %c0_11, %c0_12], %21 {strides = array<i32>} : memref<4x2x128xf32, #tpu.memory_space<vmem>>, vector<1x2x128xf32>,
    %c2 = arith.constant 2 : index
    %c0_13 = arith.constant 0 : index
    %c0_14 = arith.constant 0 : index
    %22 = vector.load %arg9[%c2, %c0_13, %c0_14] : memref<4x2x128xf32, #tpu.memory_space<vmem>>, vector<1x2x128xf32>
    %23 = vector.shape_cast %22 : vector<1x2x128xf32> to vector<2x128xf32>
    %24 = vector.shape_cast %15#2 : vector<2x128xf32> to vector<1x2x128xf32>
    tpu.vector_store %arg9[%c2, %c0_13, %c0_14], %24 {strides = array<i32>} : memref<4x2x128xf32, #tpu.memory_space<vmem>>, vector<1x2x128xf32>,
    %c3 = arith.constant 3 : index
    %c0_15 = arith.constant 0 : index
    %c0_16 = arith.constant 0 : index
    %25 = vector.load %arg9[%c3, %c0_15, %c0_16] : memref<4x2x128xf32, #tpu.memory_space<vmem>>, vector<1x2x128xf32>
    %26 = vector.shape_cast %25 : vector<1x2x128xf32> to vector<2x128xf32>
    %27 = vector.shape_cast %15#3 : vector<2x128xf32> to vector<1x2x128xf32>
    tpu.vector_store %arg9[%c3, %c0_15, %c0_16], %27 {strides = array<i32>} : memref<4x2x128xf32, #tpu.memory_space<vmem>>, vector<1x2x128xf32>,
    return
  }
  func.func @transform_0(%arg0: i32) -> i32 {
    %c0_i32 = arith.constant 0 : i32
    %c0_i32_0 = arith.constant 0 : i32
    return %c0_i32 : i32
  }
  func.func @transform_1(%arg0: i32) -> i32 {
    %c0_i32 = arith.constant 0 : i32
    %c0_i32_0 = arith.constant 0 : i32
    return %c0_i32 : i32
  }
  func.func @transform_2(%arg0: i32) -> i32 {
    %c0_i32 = arith.constant 0 : i32
    %c0_i32_0 = arith.constant 0 : i32
    return %c0_i32 : i32
  }
  func.func @transform_3(%arg0: i32) -> i32 {
    %c0_i32 = arith.constant 0 : i32
    %c0_i32_0 = arith.constant 0 : i32
    return %c0_i32 : i32
  }
  func.func @transform_4(%arg0: i32) -> (i32, i32) {
    %c0_i32 = arith.constant 0 : i32
    %c0_i32_0 = arith.constant 0 : i32
    %c0_i32_1 = arith.constant 0 : i32
    return %c0_i32, %c0_i32_0 : i32, i32
  }
  func.func @transform_5(%arg0: i32) -> (i32, i32, i32) {
    %c0_i32 = arith.constant 0 : i32
    %c0_i32_0 = arith.constant 0 : i32
    %c0_i32_1 = arith.constant 0 : i32
    return %c0_i32, %arg0, %c0_i32_0 : i32, i32, i32
  }
  func.func @transform_6(%arg0: i32) -> (i32, i32) {
    %c0_i32 = arith.constant 0 : i32
    %c0_i32_0 = arith.constant 0 : i32
    %c0_i32_1 = arith.constant 0 : i32
    return %c0_i32, %c0_i32_0 : i32, i32
  }
  func.func @transform_7(%arg0: i32) -> (i32, i32) {
    %c0_i32 = arith.constant 0 : i32
    %c0_i32_0 = arith.constant 0 : i32
    %c0_i32_1 = arith.constant 0 : i32
    return %c0_i32, %c0_i32_0 : i32, i32
  }
  func.func @transform_8(%arg0: i32) -> (i32, i32, i32) {
    %c0_i32 = arith.constant 0 : i32
    %c0_i32_0 = arith.constant 0 : i32
    %c0_i32_1 = arith.constant 0 : i32
    return %c0_i32, %arg0, %c0_i32_0 : i32, i32, i32
  }
}

</mosaic_0001>

<bundles_post_ra>
// kernel: tpu_custom_call.1
= control target key start
LH: loop header
LB: loop body
LE: loop exit
PB: predicated region body
PF: predicated region fallthrough
CT: control target
= control target key end

     0   :  { %14 = vsyncpa [#allocation5], 0  ;;  %s659_s0 = inlined_call_operand.vmem [shape: f32[4], index: 0, kind: input, shape index: {}]   ;;  %s660_s1 = inlined_call_operand.vmem [shape: f32[4], index: 1, kind: input, shape index: {}]   ;;  %s661_s2 = inlined_call_operand.vmem [shape: f32[4], index: 2, kind: input, shape index: {}]   ;;  %s662_s3 = inlined_call_operand.<no memory space> [shape: f32[1], index: 3, kind: input, shape index: {}]   ;;  %s663_s4 = inlined_call_operand.vmem [shape: f32[4,4], index: 4, kind: input, shape index: {}]   ;;  %s664_s5 = inlined_call_operand.vmem [shape: f32[4,2,128], index: 5, kind: input, shape index: {}]   ;;  %s665_s6 = inlined_call_operand.vmem [shape: f32[4,2], index: 6, kind: input, shape index: {}]   ;;  %s666_s7 = inlined_call_operand.vmem [shape: f32[4,1], index: 7, kind: input, shape index: {}]   ;;  %s667_s8 = inlined_call_operand.hbm [shape: f32[4,2,128], index: 8, kind: output, shape index: {}]  }
   0x1   :  { %15 = vsyncpa [#allocation7], 0 }
   0x2   :  { %16 = vsyncpa [#allocation10], 0  ;;  %s34_s29 = sshll.u32 %s660_s1, 4  ;;  %s35_s29 = int_to_ptr.vmem [resolvable:$true] %s34_s29 }
   0x3   :  { %17 = vsyncpa [#allocation4], 0  ;;  %s24_s10 = sshll.u32 %s659_s0, 4  ;;  %s340_s11 = scalar_lea.vmem %s35_s29, 16  ;;  %s25_s10 = int_to_ptr.vmem [resolvable:$true] %s24_s10 }
   0x4   :  { %p341_p0 = scmp.ne.s32.totalorder %s35_s29, %s340_s11  ;;  %p345_p1 = scmp.lt.s32.totalorder %s35_s29, %s35_s29 }
   0x5   :  { %p346_p2 = scmp.lt.s32.totalorder %s340_s11, %s340_s11 }
   0x7   :  { %p347_p3 = por %p346_p2, %p345_p1 }
   0x9   :  { %p348_p4 = pnand %p347_p3, %p341_p0 }
   0xb   :  { %351 = shalt.err (!%p348_p4)
}
   0xc   :  { %s456_s12 = smov [#allocation6]   ;;  %s352_s13 = scalar_lea.vmem %s25_s10, 16 }
   0xd   :  { %37 = dma.vmem_to_smem %s35_s29, 16, %s456_s12, [#allocation7]  }
   0xe   :  { %p353_p5 = scmp.ne.s32.totalorder %s25_s10, %s352_s13  ;;  %p357_p6 = scmp.lt.s32.totalorder %s25_s10, %s25_s10 }
   0xf   :  { %p358_p7 = scmp.lt.s32.totalorder %s352_s13, %s352_s13 }
  0x11   :  { %p359_p8 = por %p358_p7, %p357_p6 }
  0x13   :  { %p360_p9 = pnand %p359_p8, %p353_p5 }
  0x15   :  { %363 = shalt.err (!%p360_p9)
}
  0x16   :  { %s457_s1 = smov [#allocation3]   ;;  %s44_s15 = sshll.u32 %s661_s2, 4  ;;  %s45_s15 = int_to_ptr.vmem [resolvable:$true] %s44_s15 }
  0x17   :  { %27 = dma.vmem_to_smem %s25_s10, 16, %s457_s1, [#allocation5]  }
  0x18   :  { %s56_s18 = sshll.u32 %s663_s4, 4  ;;  %s364_s19 = scalar_lea.vmem %s45_s15, 16  ;;  %s57_s18 = int_to_ptr.vmem [resolvable:$true] %s56_s18 }
  0x19   :  { %p365_p10 = scmp.ne.s32.totalorder %s45_s15, %s364_s19  ;;  %p369_p11 = scmp.lt.s32.totalorder %s45_s15, %s45_s15 }
  0x1a   :  { %p370_p12 = scmp.lt.s32.totalorder %s364_s19, %s364_s19 }
  0x1c   :  { %p371_p13 = por %p370_p12, %p369_p11 }
  0x1e   :  { %p372_p0 = pnand %p371_p13, %p365_p10 }
  0x20   :  { %375 = shalt.err (!%p372_p0)
}
  0x21   :  { %s458_s20 = smov [#allocation8]   ;;  %s376_s21 = scalar_lea.vmem %s57_s18, 64 }
  0x22   :  { %47 = dma.vmem_to_smem %s45_s15, 16, %s458_s20, [#allocation7]  }
  0x23   :  { %p377_p1 = scmp.ne.s32.totalorder %s57_s18, %s376_s21  ;;  %p381_p2 = scmp.lt.s32.totalorder %s57_s18, %s57_s18 }
  0x24   :  { %p382_p3 = scmp.lt.s32.totalorder %s376_s21, %s376_s21 }
  0x26   :  { %p383_p4 = por %p382_p3, %p381_p2 }
  0x28   :  { %p384_p5 = pnand %p383_p4, %p377_p1 }
  0x2a   :  { %387 = shalt.err (!%p384_p5)
}
  0x2b   :  { %s459_s2 = smov [#allocation9]  }
  0x2c   :  { %59 = dma.vmem_to_smem %s57_s18, 64, %s459_s2, [#allocation10]  }
  0x2d   :  { %428 = dma.done.wait [#allocation5], 16  }
  0x2e   :  { %429 = vsyncadd [#allocation5], 4294967280 }
  0x2f   :  { %430 = dma.done.wait [#allocation7], 32  }
  0x30   :  { %431 = vsyncadd [#allocation7], 4294967264 }
  0x31   :  { %432 = dma.done.wait [#allocation10], 64  }
  0x32   :  { %433 = vsyncadd [#allocation10], 4294967232 }
  0x33   :  { %78 = sfence }
  0x34   :  { %v525_v0 = vld [vmem:[%s665_s6] sm:$0xf]  ;;  %v86_v3 = vstv %s662_s3  ;;  %v83_v5 = vld [vmem:[%s664_s5 + $0x4] sm:$0x3]  ;;  %v84_v6 = vld [vmem:[%s664_s5 + $0x6] sm:$0x3] }
  0x35   :  { %v530_v1 = vld [vmem:[%s666_s7] sm:$0xf]  ;;  %v89_v9 = vmul.f32 %v86_v3, %v83_v5   ;;  %v90_v10 = vmul.f32 %v86_v3, %v84_v6   ;;  %s555_s3 = smov 0  }
  0x36   :  { %v81_v2 = vld [vmem:[%s664_s5] sm:$0x3]  ;;  %v82_v4 = vld [vmem:[%s664_s5 + $0x2] sm:$0x3] }
  0x37   :  { %v87_v7 = vmul.f32 %v86_v3, %v81_v2   ;;  %v88_v8 = vmul.f32 %v86_v3, %v82_v4  }
  0x38 LB: > { %v460_v11 = vmov 0   ;;  %s101_s5 = sld [smem:[#allocation8 + %s454_s3]]  ;;  %s461_s7 = smov 127   ;;  %s454_s3 = sphi %s555_s3, %s96_s3   ;;  %v450_v7 = vphi %v87_v7, %v671_v7   ;;  %v446_v8 = vphi %v88_v8, %v670_v8   ;;  %v442_v9 = vphi %v89_v9, %v669_v9   ;;  %v438_v10 = vphi %v90_v10, %v668_v10  }
  0x39   : > { %337 = vset.pattern.permute.xlu0 %v460_v11  ;;  %s103_s12 = sld [smem:[#allocation6 + %s454_s3]] }
  0x3a   : > { %s577_s13 = sld [smem:[#allocation3 + %s454_s3]]  ;;  %s96_s3 = sadd.s32 1, %s454_s3  }
  0x3b   : > { %s127_s1 = sld [smem:[#allocation9]]  ;;  %p93_p6 = scmp.ge.s32.totalorder %s96_s3, 4  }
  0x3c   : > { %s265_s0 = sld [smem:[#allocation9 + $0x1]] }
  0x3d   : > { %s268_s14 = sld [smem:[#allocation9 + $0x80]] }
  0x3e   : > { %v104_v12 = vstv %s101_s5  ;;  %s266_s15 = sld [smem:[#allocation9 + $0x2]] }
  0x3f   : > { %v105_v13 = vmul.f32 %v104_v12, %v530_v1  ;;  %v120_v19 = vstv %s103_s12  ;;  %s269_s16 = sld [smem:[#allocation9 + $0x81]] }
  0x40   : > { %s270_s17 = sld [smem:[#allocation9 + $0x82]] }
  0x41   : > { %108 = vperm.xlu0 %337, %v105_v13   ;;  %s579_s18 = sld [smem:[#allocation9 + $0x100]]  ;;  %s128_s20 = smul.f32 %s127_s1, %s577_s13 }
  0x42   : > { %s581_s19 = sld [smem:[#allocation9 + $0x101]]  ;;  %s133_s2 = smul.f32 %s265_s0, %s577_s13 }
  0x43   : > { %s584_s21 = sld [smem:[#allocation9 + $0x102]]  ;;  %s153_s22 = smul.f32 %s268_s14, %s577_s13  ;;  %v129_v26 = vstv %s128_s20 }
  0x44   : > { %s587_s4 = sld [smem:[#allocation9 + $0x3]]  ;;  %s138_s24 = smul.f32 %s266_s15, %s577_s13  ;;  %v134_v27 = vstv %s133_s2  ;;  %v130_v32 = vmul.f32 %v450_v7, %v129_v26 }
  0x45   : > { %s590_s23 = sld [smem:[#allocation9 + $0x180]]  ;;  %s158_s26 = smul.f32 %s269_s16, %s577_s13  ;;  %v154_v29 = vstv %s153_s22  ;;  %v135_v35 = vmul.f32 %v446_v8, %v134_v27 }
  0x46   : > { %s593_s25 = sld [smem:[#allocation9 + $0x83]]  ;;  %s163_s28 = smul.f32 %s270_s17, %s577_s13  ;;  %v139_v28 = vstv %s138_s24  ;;  %v155_v37 = vmul.f32 %v450_v7, %v154_v29 }
  0x47   : > { %s596_s27 = sld [smem:[#allocation9 + $0x181]]  ;;  %s178_s30 = smul.f32 %s579_s18, %s577_s13  ;;  %v159_v30 = vstv %s158_s26  ;;  %v140_v36 = vmul.f32 %v442_v9, %v139_v28 }
  0x48   : > { %s599_s29 = sld [smem:[#allocation9 + $0x103]]  ;;  %s183_s6 = smul.f32 %s581_s19, %s577_s13  ;;  %v164_v31 = vstv %s163_s28  ;;  %v160_v40 = vmul.f32 %v446_v8, %v159_v30 }
  0x49   : > { %s603_s9 = sld [smem:[#allocation9 + $0x182]]  ;;  %s188_s10 = smul.f32 %s584_s21, %s577_s13  ;;  %v179_v33 = vstv %s178_s30  ;;  %v165_v41 = vmul.f32 %v442_v9, %v164_v31 }
  0x4a   : > { %s609_s11 = sld [smem:[#allocation9 + $0x183]]  ;;  %s143_s5 = smul.f32 %s587_s4, %s577_s13  ;;  %v184_v34 = vstv %s183_s6  ;;  %v180_v44 = vmul.f32 %v450_v7, %v179_v33 }
  0x4b   : > { %v185_v45 = vmul.f32 %v446_v8, %v184_v34  ;;  %v189_v46 = vstv %s188_s10 }
  0x4c   : > { %s168_s12 = smul.f32 %s593_s25, %s577_s13  ;;  %v144_v38 = vstv %s143_s5  ;;  %v190_v2 = vmul.f32 %v442_v9, %v189_v46 }
  0x4d   : > { %s208_s1 = smul.f32 %s596_s27, %s577_s13  ;;  %v145_v48 = vmul.f32 %v438_v10, %v144_v38 }
  0x4e   : > { %s193_s14 = smul.f32 %s599_s29, %s577_s13  ;;  %v169_v49 = vstv %s168_s12 }
  0x4f   : > { %s213_s15 = smul.f32 %s603_s9, %s577_s13  ;;  %v209_v50 = vstv %s208_s1  ;;  %v170_v3 = vmul.f32 %v438_v10, %v169_v49 }
  0x50   : > { %s218_s18 = smul.f32 %s609_s11, %s577_s13  ;;  %v194_v56 = vstv %s193_s14  ;;  %v210_v62 = vmul.f32 %v446_v8, %v209_v50 }
  0x51   : > { %v214_v58 = vstv %s213_s15  ;;  %v195_v13 = vmul.f32 %v438_v10, %v194_v56 }
  0x52   : > { %v219_v4 = vstv %s218_s18  ;;  %v215_v11 = vmul.f32 %v442_v9, %v214_v58 }
  0xbc   : > { %v109_v14 = vpop.permute.xlu0 %108 }
  0xbd   : > { %v111_v15 = vadd.f32 %v109_v14, %v525_v0 }
  0xbf   : > { %338 = vtanh.f32 %v111_v15 }
  0xcc   : > { %v339_v16 = vpop.eup %338 }
  0xcd   : > { %v114_v17 = vmul.f32 7.5, %v339_v16  ;;  %v113_v18 = vmul.f32 -6.5, %v339_v16 }
  0xcf   : > { %116 = vrot.lane.b32.xlu0 %v114_v17, %s461_s7  ;;  %s203_s7 = smul.f32 %s590_s23, %s577_s13  ;;  %v220_v17 = vmul.f32 %v438_v10, %v219_v4  ;;  %s462_s13 = smov (%p93_p6), [#allocation11]  }
  0xd0   :  { %s234_s20 = sshll.u32 (%p93_p6), %s462_s13, 4  ;;  %s235_s20 = int_to_ptr.vmem [resolvable:$true] %s234_s20 }
  0xd1   : > { %v204_v42 = vstv %s203_s7  ;;  %s388_s21 = scalar_lea.vmem (%p93_p6), %s235_s20, 128  ;;  %p393_p8 = scmp.lt.s32.totalorder (%p93_p6), %s235_s20, %s235_s20 }
  0xd2   : > { %v205_v54 = vmul.f32 %v450_v7, %v204_v42  ;;  %p389_p7 = scmp.ne.s32.totalorder (%p93_p6), %s235_s20, %s388_s21  ;;  %p394_p9 = scmp.lt.s32.totalorder (%p93_p6), %s388_s21, %s388_s21 }
  0xd4   :  { %p395_p10 = por (%p93_p6), %p394_p9, %p393_p8 }
  0xd6   :  { %p396_p11 = pnand (%p93_p6), %p395_p10, %p389_p7 }
 0x141   : > { %v117_v20 = vpop.permute.xlu0 %116 }
 0x142   : > { %v119_v21 = vadd.f32 %v117_v20, %v113_v18 }
 0x144   : > { %v121_v22 = vmul.f32 %v120_v19, %v119_v21 }
 0x146   : > { %280 = vpush %v121_v22  ;;  %v147_v23 = vrot.slane %v121_v22, 1  ;;  %v172_v24 = vrot.slane %v121_v22, 2  ;;  %v197_v25 = vrot.slane %v121_v22, 3 }
 0x148   : > { %282 = vpush %v147_v23 }
 0x149   : > { %284 = vpush %v172_v24 }
 0x14a   : > { %286 = vpush %v197_v25 }
 0x177   : > { %s281_s0 = spop %280 }
 0x178   : > { %v124_v39 = vstv %s281_s0 }
 0x179   : > { %v126_v43 = vadd.f32 %v450_v7, %v124_v39  ;;  %s283_s16 = spop %282 }
 0x17a   : > { %v149_v47 = vstv %s283_s16  ;;  %s285_s17 = spop %284 }
 0x17b   : > { %v131_v51 = vadd.f32 %v130_v32, %v126_v43  ;;  %v151_v52 = vadd.f32 %v446_v8, %v149_v47  ;;  %v174_v53 = vstv %s285_s17  ;;  %s287_s19 = spop %286 }
 0x17c   : > { %v176_v55 = vadd.f32 %v442_v9, %v174_v53  ;;  %v199_v57 = vstv %s287_s19 }
 0x17d   : > { %v136_v59 = vadd.f32 %v135_v35, %v131_v51  ;;  %v156_v60 = vadd.f32 %v155_v37, %v151_v52  ;;  %v201_v61 = vadd.f32 %v438_v10, %v199_v57 }
 0x17e   : > { %v181_v63 = vadd.f32 %v180_v44, %v176_v55 }
 0x17f   : > { %v141_v5 = vadd.f32 %v140_v36, %v136_v59  ;;  %v161_v6 = vadd.f32 %v160_v40, %v156_v60  ;;  %v206_v7 = vadd.f32 %v205_v54, %v201_v61 }
 0x180   : > { %v186_v12 = vadd.f32 %v185_v45, %v181_v63 }
 0x181   : > { %v166_v14 = vadd.f32 %v165_v41, %v161_v6  ;;  %v146_v15 = vadd.f32 %v145_v48, %v141_v5   ;;  %v211_v16 = vadd.f32 %v210_v62, %v206_v7 }
 0x182   : > { %v191_v8 = vadd.f32 %v190_v2, %v186_v12 }
 0x183   : > { %v171_v18 = vadd.f32 %v170_v3, %v166_v14   ;;  %v216_v19 = vadd.f32 %v215_v11, %v211_v16  ;;  %v671_v7 = vmov %v146_v15  ;;  %95 = sbr.rel (!%p93_p6) target bundleno = 56 (0x38), region = 78  ;;  %222 = vst [vmem:[#allocation11] sm:$0x3] (%p93_p6), %v146_v15 }
 0x184   : > { %v196_v20 = vadd.f32 %v195_v13, %v191_v8  }
 0x185   : > { %v221_v21 = vadd.f32 %v220_v17, %v216_v19   ;;  %v670_v8 = vmov %v171_v18  ;;  %224 = vst [vmem:[#allocation11 + $0x2] sm:$0x3] (%p93_p6), %v171_v18 }
 0x186   : > { %v669_v9 = vmov %v196_v20  ;;  %226 = vst [vmem:[#allocation11 + $0x4] sm:$0x3] (%p93_p6), %v196_v20 }
 0x187   : > { %v668_v10 = vmov %v221_v21  ;;  %228 = vst [vmem:[#allocation11 + $0x6] sm:$0x3] (%p93_p6), %v221_v21 }
 0x188   :  { %399 = shalt.err (!%p396_p11)
}
 0x189   :  { %s463_s2 = smov 32   ;;  %s464_s4 = smov 2  }
 0x18a   :  { %240 = dma.vmem_to_hbm [thread:$0]  %s235_s20, 128, %s667_s8, [#allocation4], %s463_s2, %s463_s2, %s464_s4  }
 0x18b   :  { %434 = dma.done.wait [#allocation4], 128  }
 0x18c   :  { %435 = vsyncadd [#allocation4], 4294967168 }
 0x18d   :  { %244 = vsyncpa [#allocation4], 1 }
 0x18e   :  { %245 = vsyncpa [#allocation5], 1 }
 0x18f   :  { %246 = vsyncpa [#allocation7], 1 }
 0x190   :  { %247 = vsyncpa [#allocation10], 1 }

</bundles_post_ra>
